<compile_context>
chip_gen: v6e
topology: v6e:2x2x1
jax: 0.10.0
libtpu: 0.0.40
codegen_flags: <defaults>
</compile_context>

<pallas_src>
import functools

import jax
import jax.numpy as jnp
from jax import lax
from jax.experimental import pallas as pl
from jax.experimental.pallas import tpu as pltpu


_HEAD = 128  # lane-dense width of the padded 1-wide regression head


def _round_up(x, m):
    return (x + m - 1) // m * m


def _tpu_vmem_capacity_bytes():
    cap = 64 << 20  # conservative default (v7x physical VMEM per TensorCore)
    try:
        info = pltpu.get_tpu_info()
        cap = int(getattr(info, "vmem_capacity_bytes", cap)) or cap
    except Exception:
        pass
    return cap


def _row_tile(n_pad):
    # n_pad is a multiple of 128, so this always returns >= 128.
    for t in (512, 256, 128):
        if n_pad % t == 0:
            return t
    return n_pad


# ----------------------------- Pallas kernel --------------------------------
def _gcn_stack_kernel(a_ref, x_ref, w_ref, b_ref, o_ref, h_scr, xw_scr, *,
                      tm, n_stripes, f_pad, head, stream_a):
    """Fused L-layer GCN forward.  Grid = (layer, row_tile)."""
    l = pl.program_id(0)
    i = pl.program_id(1)
    n_layers = pl.num_programs(0)
    is_last = l == n_layers - 1

    # ---- once per layer (row tile 0): XW = H_l @ W_l in tm-row stripes -----
    def _xw_from(src_ref):
        def stripe(s, carry):
            r0 = pl.multiple_of(s * tm, tm)
            rows = src_ref[pl.ds(r0, tm), :]
            if head < f_pad:
                # Last layer: only the first `head` output lanes are real.
                @pl.when(is_last)
                def _():
                    xw_scr[pl.ds(r0, tm), :head] = jnp.dot(
                        rows, w_ref[0][:, :head],
                        preferred_element_type=jnp.float32,
                    ).astype(jnp.bfloat16)

                @pl.when(jnp.logical_not(is_last))
                def _():
                    xw_scr[pl.ds(r0, tm), :] = jnp.dot(
                        rows, w_ref[0],
                        preferred_element_type=jnp.float32,
                    ).astype(jnp.bfloat16)
            else:
                xw_scr[pl.ds(r0, tm), :] = jnp.dot(
                    rows, w_ref[0], preferred_element_type=jnp.float32
                ).astype(jnp.bfloat16)
            return carry

        lax.fori_loop(0, n_stripes, stripe, 0, unroll=n_stripes <= 8)

    @pl.when((l == 0) & (i == 0))
    def _():
        _xw_from(x_ref)      # layer 0 reads the input features directly

    @pl.when((l > 0) & (i == 0))
    def _():
        _xw_from(h_scr)      # later layers read the resident activations

    # ---- per row tile: A_hat[rows] @ XW ; bias (+ ReLU) in f32 -------------
    row0 = pl.multiple_of(i * tm, tm)
    if stream_a:
        a_rows = a_ref[...]                       # streamed (tm, n_pad) stripe
    else:
        a_rows = a_ref[pl.ds(row0, tm), :]        # slice of resident A_hat

    @pl.when(jnp.logical_not(is_last))
    def _():
        h = jnp.dot(a_rows, xw_scr[...], preferred_element_type=jnp.float32)
        h = jnp.maximum(h + b_ref[0], 0.0)        # ReLU on hidden layers
        # F.dropout(p, training=False) == identity in inference mode.
        h_scr[pl.ds(row0, tm), :] = h.astype(jnp.bfloat16)

    @pl.when(is_last)
    def _():
        h = jnp.dot(a_rows, xw_scr[:, :head], preferred_element_type=jnp.float32)
        h = h + b_ref[0][:, :head]
        o_ref[pl.ds(row0, tm), :] = h.astype(o_ref.dtype)   # lane-dense store


def gcn_stack_forward(a_hat, x, w_all, b_all):
    """Run the whole GCN stack; returns padded (N_pad, 128) f32 head block."""
    n = a_hat.shape[0]
    f_in = x.shape[1]
    n_layers, f_pad, _ = w_all.shape
    head = _HEAD

    # 256-row padding keeps the M tile >= 256 (full v6e/v7x MXU occupancy) for
    # anything beyond one tile; on v5e (128x128 MXU) 256-tiles are also fine.
    n_pad = _round_up(max(n, 128), 128 if n <= 128 else 256)
    tm = _row_tile(n_pad)
    m_tiles = n_pad // tm

    # Zero-padding is exact: padded A rows/cols are 0, so real-node outputs are
    # unaffected; padded rows / extra head lanes are sliced away by the caller.
    a_bf = jnp.zeros((n_pad, n_pad), jnp.float32).at[:n, :n].set(a_hat)
    a_bf = a_bf.astype(jnp.bfloat16)
    x_bf = jnp.zeros((n_pad, f_pad), jnp.float32).at[:n, :f_in].set(x)
    x_bf = x_bf.astype(jnp.bfloat16)
    w_bf = w_all.astype(jnp.bfloat16)
    b_f32 = b_all.astype(jnp.float32)

    cap = _tpu_vmem_capacity_bytes()
    budget = cap * 3 // 4  # headroom below physical VMEM for compiler scratch

    common = (
        n_pad * f_pad * 2          # X (bf16, Buffered(1), resident)
        + 2 * f_pad * f_pad * 2    # W_l block (double-buffered)
        + 2 * 1 * f_pad * 4        # bias block
        + 2 * n_pad * head * 4     # output block (constant index)
        + 2 * n_pad * f_pad * 2    # H + XW scratch (bf16)
        + 2 * tm * f_pad * 4       # f32 temporaries of the two striped dots
        + (4 << 20)                # compiler / internal scratch slack
    )
    req_resident = common + n_pad * n_pad * 2      # A resident, single buffer
    req_streamed = common + 2 * tm * n_pad * 2     # A streamed row stripes

    if req_resident <= budget:
        stream_a = False
        required = req_resident
        # A_hat: constant index, single-buffered -> fetched from HBM once.
        a_spec = pl.BlockSpec((n_pad, n_pad), lambda l, i: (0, 0),
                              pipeline_mode=pl.Buffered(1))
    elif req_streamed <= budget:
        # v7x-class VMEM: stream A row stripes; re-read once per layer (cheap
        # against ~3.2 TB/s HBM) and frees roughly half of VMEM.
        stream_a = True
        required = req_streamed
        a_spec = pl.BlockSpec((tm, n_pad), lambda l, i: (i, 0))
    else:
        raise ValueError(
            "GCN graph too large for dense VMEM kernel: needs "
            f"{req_streamed >> 20} MiB, budget {budget >> 20} MiB. "
            "TODO(synk): block-sparse / CSR A_hat path for large graphs.")

    kernel = functools.partial(
        _gcn_stack_kernel, tm=tm, n_stripes=m_tiles, f_pad=f_pad, head=head,
        stream_a=stream_a)

    return pl.pallas_call(
        kernel,
        out_shape=jax.ShapeDtypeStruct((n_pad, head), jnp.float32),
        grid_spec=pltpu.PrefetchScalarGridSpec(
            num_scalar_prefetch=0,
            grid=(n_layers, m_tiles),
            in_specs=[
                a_spec,
                # X: only read at l == 0; fetched once, single-buffered.
                pl.BlockSpec((n_pad, f_pad), lambda l, i: (0, 0),
                             pipeline_mode=pl.Buffered(1)),
                # Per-layer weight / bias blocks (re-fetched at layer change).
                pl.BlockSpec((1, f_pad, f_pad), lambda l, i: (l, 0, 0)),
                pl.BlockSpec((1, 1, f_pad), lambda l, i: (l, 0, 0)),
            ],
            # Constant-index full output block: written in row tiles at the
            # last layer only, DMA'd back to HBM exactly once at grid end.
            out_specs=pl.BlockSpec((n_pad, head), lambda l, i: (0, 0)),
            scratch_shapes=[
                pltpu.VMEM((n_pad, f_pad), jnp.bfloat16),   # H (activations)
                pltpu.VMEM((n_pad, f_pad), jnp.bfloat16),   # X @ W_l cache
            ],
        ),
        compiler_params=pltpu.CompilerParams(
            # Both axes carry true sequential dependencies through H / XW.
            dimension_semantics=("arbitrary", "arbitrary"),
            vmem_limit_bytes=int(min(max(required, 32 << 20), budget)),
        ),
    )(a_bf, x_bf, w_bf, b_f32)


# ------------------------------ JAX glue -------------------------------------
def build_normalized_adjacency(edge_index, edge_weight, num_nodes):
    """Dense D^{-1/2}(A+I)D^{-1/2} with A[dst, src] = edge_weight (PyG gcn_norm)."""
    src = edge_index[0]
    dst = edge_index[1]
    a = jnp.zeros((num_nodes, num_nodes), jnp.float32)
    a = a.at[dst, src].add(edge_weight.astype(jnp.float32))
    a = a + jnp.eye(num_nodes, dtype=jnp.float32)  # self loops, weight 1.0
    deg = a.sum(axis=1)
    dinv = jnp.where(deg > 0, 1.0 / jnp.sqrt(deg), 0.0)
    return dinv[:, None] * a * dinv[None, :]


def init_params(key, in_channels, hidden_channels, num_layers):
    """Deterministic Glorot-ish init. Weight layout is (F_in, F_out)."""
    dims = [in_channels] + [hidden_channels] * (num_layers - 1) + [1]
    params = []
    for i in range(num_layers):
        key, wk = jax.random.split(key)
        f_in, f_out = dims[i], dims[i + 1]
        scale = jnp.sqrt(2.0 / (f_in + f_out)).astype(jnp.float32)
        w = scale * jax.random.normal(wk, (f_in, f_out), jnp.float32)
        b = jnp.zeros((f_out,), jnp.float32)
        params.append((w, b))
    return params


def _pack_params(params, f_pad):
    """Stack per-layer (W, b) into padded (L, F_pad, F_pad) / (L, 1, F_pad)."""
    n_layers = len(params)
    w_all = jnp.zeros((n_layers, f_pad, f_pad), jnp.float32)
    b_all = jnp.zeros((n_layers, 1, f_pad), jnp.float32)
    for l, (w, b) in enumerate(params):
        f_in, f_out = w.shape
        w_all = w_all.at[l, :f_in, :f_out].set(w)
        b_all = b_all.at[l, 0, :f_out].set(b)
    return w_all, b_all


def gcn_regressor_forward(x, edge_index, edge_weight, params):
    """Full GCNRegressor forward (inference: dropout is identity)."""
    n = x.shape[0]
    a_hat = build_normalized_adjacency(edge_index, edge_weight, n)
    f_dims = [x.shape[1]] + [w.shape[1] for w, _ in params]
    f_pad = _round_up(max(f_dims + [128]), 128)     # lane-dense feature width
    w_all, b_all = _pack_params(params, f_pad)
    out = gcn_stack_forward(a_hat, x.astype(jnp.float32), w_all, b_all)
    # Real nodes are rows [:n]; the final layer's single channel is column 0.
    return out[:n, 0]                               # x.squeeze() -> shape (N,)


# ------------------------------- main ----------------------------------------
if __name__ == "__main__":
    key = jax.random.PRNGKey(0)
    k_x, k_e, k_w, k_p = jax.random.split(key, 4)

    # Small synthetic graph consistent with the module's forward().
    num_nodes = 16
    in_channels = 8
    hidden_channels = 32
    num_layers = 3
    dropout = 0.1  # unused in inference

    # Node features data.x : [N, in_channels]
    x = jax.random.normal(k_x, (num_nodes, in_channels), jnp.float32)

    # Edges: ring graph (both directions) + a few extra deterministic edges.
    src_ring = jnp.arange(num_nodes, dtype=jnp.int32)
    dst_ring = (src_ring + 1) % num_nodes
    extra_src = jax.random.randint(k_e, (8,), 0, num_nodes, jnp.int32)
    extra_dst = (extra_src + 5) % num_nodes
    src = jnp.concatenate([src_ring, dst_ring, extra_src])
    dst = jnp.concatenate([dst_ring, src_ring, extra_dst])
    edge_index = jnp.stack([src, dst], axis=0)      # data.edge_index : [2, E]
    # data.edge_attr : [E, 1] -> squeezed positive edge weights
    edge_weight = jax.random.uniform(
        k_w, (edge_index.shape[1],), jnp.float32, 0.1, 1.0
    )

    params = init_params(k_p, in_channels, hidden_channels, num_layers)

    out = gcn_regressor_forward(x, edge_index, edge_weight, params)
    out = jax.block_until_ready(out)
    assert out.shape == (num_nodes,), out.shape
    assert jnp.all(jnp.isfinite(out))

    # Validate the bf16-operand / f32-accumulate kernel against a pure-f32 path
    # (review correctness concern: repeated bf16 round-trips across layers).
    a_hat = build_normalized_adjacency(edge_index, edge_weight, num_nodes)
    ref = x.astype(jnp.float32)
    for li, (w, b) in enumerate(params):
        ref = a_hat @ (ref @ w) + b
        if li < len(params) - 1:
            ref = jnp.maximum(ref, 0.0)
    ref = ref[:, 0]
    assert jnp.allclose(out, ref, rtol=5e-2, atol=5e-2), (
        float(jnp.max(jnp.abs(out - ref))))

    print("KERNEL_OK")
</pallas_src>

<mosaic_0001>
module attributes {stable_mosaic.version = 11 : i64} {
  func.func @_gcn_stack_kernel(%arg0: i32, %arg1: i32, %arg2: memref<128x128xbf16, #tpu.memory_space<vmem>>, %arg3: memref<128x128xbf16, #tpu.memory_space<vmem>>, %arg4: memref<1x128x128xbf16, #tpu.memory_space<vmem>>, %arg5: memref<1x1x128xf32, #tpu.memory_space<vmem>>, %arg6: memref<128x128xf32, #tpu.memory_space<vmem>>, %arg7: memref<128x128xbf16, #tpu.memory_space<vmem>>, %arg8: memref<128x128xbf16, #tpu.memory_space<vmem>>) attributes {dimension_semantics = [#tpu.dimension_semantics<arbitrary>, #tpu.dimension_semantics<arbitrary>], iteration_bounds = array<i64: 3, 1>, scalar_prefetch = 0 : i64, scratch_operands = 2 : i64, tpu.core_type = #tpu.core_type<tc>, window_params = [{pipeline_mode = #tpu.pipeline_mode<synchronous>, transform_indices = @transform_0, window_bounds = array<i64: 128, 128>}, {pipeline_mode = #tpu.pipeline_mode<synchronous>, transform_indices = @transform_1, window_bounds = array<i64: 128, 128>}, {transform_indices = @transform_2, window_bounds = array<i64: 1, 128, 128>}, {transform_indices = @transform_3, window_bounds = array<i64: 1, 1, 128>}, {pipeline_mode = #tpu.pipeline_mode<synchronous>, transform_indices = @transform_4, window_bounds = array<i64: 128, 128>}]} {
    %c2_i32 = arith.constant 2 : i32
    %0 = arith.cmpi eq, %arg0, %c2_i32 : i32
    %c0_i32 = arith.constant 0 : i32
    %1 = arith.cmpi eq, %arg0, %c0_i32 : i32
    %c0_i32_0 = arith.constant 0 : i32
    %2 = arith.cmpi eq, %arg1, %c0_i32_0 : i32
    %3 = arith.andi %1, %2 : i1
    %4 = arith.extui %3 : i1 to i32
    %c0_i32_1 = arith.constant 0 : i32
    %5 = arith.cmpi ne, %4, %c0_i32_1 : i32
    scf.if %5 {
      %c0_i32_7 = arith.constant 0 : i32
      %c128_i32_8 = arith.constant 128 : i32
      %20 = arith.muli %c0_i32_7, %c128_i32_8 : i32
      %21 = tpu.assume_multiple %20, 128 : i32
      %22 = arith.index_cast %21 : i32 to index
      %c0_9 = arith.constant 0 : index
      %23 = vector.load %arg3[%22, %c0_9] : memref<128x128xbf16, #tpu.memory_space<vmem>>, vector<128x128xbf16>
      %c0_10 = arith.constant 0 : index
      %c0_11 = arith.constant 0 : index
      %c0_12 = arith.constant 0 : index
      %24 = vector.load %arg4[%c0_10, %c0_11, %c0_12] : memref<1x128x128xbf16, #tpu.memory_space<vmem>>, vector<1x128x128xbf16>
      %25 = vector.shape_cast %24 : vector<1x128x128xbf16> to vector<128x128xbf16>
      %cst = arith.constant dense<0.000000e+00> : vector<128x128xf32>
      %26 = tpu.matmul %23, %25, %cst {dimension_numbers = #tpu.dot_dimension_numbers<[1], [0], [0], [1], [0, 0, 1, 1], [], []>} : vector<128x128xbf16>, vector<128x128xbf16>, vector<128x128xf32> -> vector<128x128xf32>
      %27 = arith.truncf %26 : vector<128x128xf32> to vector<128x128xbf16>
      %28 = arith.index_cast %21 : i32 to index
      %c0_13 = arith.constant 0 : index
      %29 = vector.load %arg8[%28, %c0_13] : memref<128x128xbf16, #tpu.memory_space<vmem>>, vector<128x128xbf16>
      tpu.vector_store %arg8[%28, %c0_13], %27 {strides = array<i32>} : memref<128x128xbf16, #tpu.memory_space<vmem>>, vector<128x128xbf16>,
      %c1_i32 = arith.constant 1 : i32
    } else {
    }
    %c0_i32_2 = arith.constant 0 : i32
    %6 = arith.cmpi sgt, %arg0, %c0_i32_2 : i32
    %c0_i32_3 = arith.constant 0 : i32
    %7 = arith.cmpi eq, %arg1, %c0_i32_3 : i32
    %8 = arith.andi %6, %7 : i1
    %9 = arith.extui %8 : i1 to i32
    %c0_i32_4 = arith.constant 0 : i32
    %10 = arith.cmpi ne, %9, %c0_i32_4 : i32
    scf.if %10 {
      %c0_i32_7 = arith.constant 0 : i32
      %c128_i32_8 = arith.constant 128 : i32
      %20 = arith.muli %c0_i32_7, %c128_i32_8 : i32
      %21 = tpu.assume_multiple %20, 128 : i32
      %22 = arith.index_cast %21 : i32 to index
      %c0_9 = arith.constant 0 : index
      %23 = vector.load %arg7[%22, %c0_9] : memref<128x128xbf16, #tpu.memory_space<vmem>>, vector<128x128xbf16>
      %c0_10 = arith.constant 0 : index
      %c0_11 = arith.constant 0 : index
      %c0_12 = arith.constant 0 : index
      %24 = vector.load %arg4[%c0_10, %c0_11, %c0_12] : memref<1x128x128xbf16, #tpu.memory_space<vmem>>, vector<1x128x128xbf16>
      %25 = vector.shape_cast %24 : vector<1x128x128xbf16> to vector<128x128xbf16>
      %cst = arith.constant dense<0.000000e+00> : vector<128x128xf32>
      %26 = tpu.matmul %23, %25, %cst {dimension_numbers = #tpu.dot_dimension_numbers<[1], [0], [0], [1], [0, 0, 1, 1], [], []>} : vector<128x128xbf16>, vector<128x128xbf16>, vector<128x128xf32> -> vector<128x128xf32>
      %27 = arith.truncf %26 : vector<128x128xf32> to vector<128x128xbf16>
      %28 = arith.index_cast %21 : i32 to index
      %c0_13 = arith.constant 0 : index
      %29 = vector.load %arg8[%28, %c0_13] : memref<128x128xbf16, #tpu.memory_space<vmem>>, vector<128x128xbf16>
      tpu.vector_store %arg8[%28, %c0_13], %27 {strides = array<i32>} : memref<128x128xbf16, #tpu.memory_space<vmem>>, vector<128x128xbf16>,
      %c1_i32 = arith.constant 1 : i32
    } else {
    }
    %c128_i32 = arith.constant 128 : i32
    %11 = arith.muli %arg1, %c128_i32 : i32
    %12 = tpu.assume_multiple %11, 128 : i32
    %13 = arith.index_cast %12 : i32 to index
    %c0 = arith.constant 0 : index
    %14 = vector.load %arg2[%13, %c0] : memref<128x128xbf16, #tpu.memory_space<vmem>>, vector<128x128xbf16>
    %true = arith.constant true
    %15 = arith.xori %0, %true : i1
    %16 = arith.extui %15 : i1 to i32
    %c0_i32_5 = arith.constant 0 : i32
    %17 = arith.cmpi ne, %16, %c0_i32_5 : i32
    scf.if %17 {
      %c0_7 = arith.constant 0 : index
      %c0_8 = arith.constant 0 : index
      %20 = vector.load %arg8[%c0_7, %c0_8] : memref<128x128xbf16, #tpu.memory_space<vmem>>, vector<128x128xbf16>
      %cst = arith.constant dense<0.000000e+00> : vector<128x128xf32>
      %21 = tpu.matmul %14, %20, %cst {dimension_numbers = #tpu.dot_dimension_numbers<[1], [0], [0], [1], [0, 0, 1, 1], [], []>} : vector<128x128xbf16>, vector<128x128xbf16>, vector<128x128xf32> -> vector<128x128xf32>
      %c0_9 = arith.constant 0 : index
      %c0_10 = arith.constant 0 : index
      %c0_11 = arith.constant 0 : index
      %22 = vector.load %arg5[%c0_9, %c0_10, %c0_11] : memref<1x1x128xf32, #tpu.memory_space<vmem>>, vector<1x1x128xf32>
      %23 = vector.shape_cast %22 : vector<1x1x128xf32> to vector<1x128xf32>
      %24 = vector.broadcast %23 : vector<1x128xf32> to vector<128x128xf32>
      %25 = arith.addf %21, %24 : vector<128x128xf32>
      %cst_12 = arith.constant 0.000000e+00 : f32
      %26 = vector.broadcast %cst_12 : f32 to vector<128x128xf32>
      %27 = arith.maximumf %25, %26 : vector<128x128xf32>
      %28 = arith.truncf %27 : vector<128x128xf32> to vector<128x128xbf16>
      %29 = arith.index_cast %12 : i32 to index
      %c0_13 = arith.constant 0 : index
      %30 = vector.load %arg7[%29, %c0_13] : memref<128x128xbf16, #tpu.memory_space<vmem>>, vector<128x128xbf16>
      tpu.vector_store %arg7[%29, %c0_13], %28 {strides = array<i32>} : memref<128x128xbf16, #tpu.memory_space<vmem>>, vector<128x128xbf16>,
    } else {
    }
    %18 = arith.extui %0 : i1 to i32
    %c0_i32_6 = arith.constant 0 : i32
    %19 = arith.cmpi ne, %18, %c0_i32_6 : i32
    scf.if %19 {
      %c0_7 = arith.constant 0 : index
      %c0_8 = arith.constant 0 : index
      %20 = vector.load %arg8[%c0_7, %c0_8] : memref<128x128xbf16, #tpu.memory_space<vmem>>, vector<128x128xbf16>
      %cst = arith.constant dense<0.000000e+00> : vector<128x128xf32>
      %21 = tpu.matmul %14, %20, %cst {dimension_numbers = #tpu.dot_dimension_numbers<[1], [0], [0], [1], [0, 0, 1, 1], [], []>} : vector<128x128xbf16>, vector<128x128xbf16>, vector<128x128xf32> -> vector<128x128xf32>
      %c0_9 = arith.constant 0 : index
      %c0_10 = arith.constant 0 : index
      %c0_11 = arith.constant 0 : index
      %22 = vector.load %arg5[%c0_9, %c0_10, %c0_11] : memref<1x1x128xf32, #tpu.memory_space<vmem>>, vector<1x1x128xf32>
      %23 = vector.shape_cast %22 : vector<1x1x128xf32> to vector<1x128xf32>
      %24 = vector.broadcast %23 : vector<1x128xf32> to vector<128x128xf32>
      %25 = arith.addf %21, %24 : vector<128x128xf32>
      %26 = arith.index_cast %12 : i32 to index
      %c0_12 = arith.constant 0 : index
      %27 = vector.load %arg6[%26, %c0_12] : memref<128x128xf32, #tpu.memory_space<vmem>>, vector<128x128xf32>
      tpu.vector_store %arg6[%26, %c0_12], %25 {strides = array<i32>} : memref<128x128xf32, #tpu.memory_space<vmem>>, vector<128x128xf32>,
    } else {
    }
    return
  }
  func.func @transform_0(%arg0: i32, %arg1: i32) -> (i32, i32) {
    %c0_i32 = arith.constant 0 : i32
    %c0_i32_0 = arith.constant 0 : i32
    %c0_i32_1 = arith.constant 0 : i32
    return %c0_i32, %c0_i32_0 : i32, i32
  }
  func.func @transform_1(%arg0: i32, %arg1: i32) -> (i32, i32) {
    %c0_i32 = arith.constant 0 : i32
    %c0_i32_0 = arith.constant 0 : i32
    %c0_i32_1 = arith.constant 0 : i32
    return %c0_i32, %c0_i32_0 : i32, i32
  }
  func.func @transform_2(%arg0: i32, %arg1: i32) -> (i32, i32, i32) {
    %c0_i32 = arith.constant 0 : i32
    %c0_i32_0 = arith.constant 0 : i32
    %c0_i32_1 = arith.constant 0 : i32
    return %arg0, %c0_i32, %c0_i32_0 : i32, i32, i32
  }
  func.func @transform_3(%arg0: i32, %arg1: i32) -> (i32, i32, i32) {
    %c0_i32 = arith.constant 0 : i32
    %c0_i32_0 = arith.constant 0 : i32
    %c0_i32_1 = arith.constant 0 : i32
    return %arg0, %c0_i32, %c0_i32_0 : i32, i32, i32
  }
  func.func @transform_4(%arg0: i32, %arg1: i32) -> (i32, i32) {
    %c0_i32 = arith.constant 0 : i32
    %c0_i32_0 = arith.constant 0 : i32
    %c0_i32_1 = arith.constant 0 : i32
    return %c0_i32, %c0_i32_0 : i32, i32
  }
}

</mosaic_0001>

<bundles_post_ra>
// kernel: tpu_custom_call.1
= control target key start
LH: loop header
LB: loop body
LE: loop exit
PB: predicated region body
PF: predicated region fallthrough
CT: control target
= control target key end

     0   :  { %9 = vsyncpa [#allocation5], 0  ;;  %s2723_s0 = inlined_call_operand.hbm [shape: bf16[128,128], index: 0, kind: input, shape index: {}]   ;;  %s2724_s1 = inlined_call_operand.hbm [shape: bf16[128,128], index: 1, kind: input, shape index: {}]   ;;  %s2725_s2 = inlined_call_operand.hbm [shape: bf16[3,128,128], index: 2, kind: input, shape index: {}]   ;;  %s2726_s3 = inlined_call_operand.vmem [shape: f32[3,1,128], index: 3, kind: input, shape index: {}]   ;;  %s2727_s4 = inlined_call_operand.hbm [shape: f32[128,128], index: 4, kind: output, shape index: {}]  }
   0x1   :  { %10 = vsyncpa [#allocation8], 0 }
   0x2   :  { %11 = vsyncpa [#allocation6], 0  ;;  %s2475_s15 = smov 0   ;;  %s2477_s16 = smov 0  }
   0x3   :  { %s2479_s17 = smov 0   ;;  %s2481_s18 = smov 0  }
   0x4   :  { %s2483_s19 = smov 0   ;;  %s2485_s20 = smov 0  }
   0x5 LB: > { %s2504_s21 = sadd.s32 4294967295, %s2440_s20   ;;  %p85_p0 = scmp.ne.s32.totalorder %s2428_s17, %s2424_s16  ;;  %s2440_s20 = sphi %s2485_s20, %s17_s20   ;;  %s2436_s19 = sphi %s2483_s19, %s2743_s19   ;;  %s2432_s18 = sphi %s2481_s18, %s2742_s18   ;;  %s2428_s17 = sphi %s2479_s17, %s2741_s17   ;;  %s2424_s16 = sphi %s2477_s16, %s2740_s16   ;;  %s2420_s15 = sphi %s2475_s15, %s2739_s15  }
   0x6   : > { %p86_p1 = scmp.eq.s32.totalorder %s2440_s20, 0  ;;  %p91_p2 = scmp.ne.s32.totalorder %s2424_s16, %s2420_s15 }
   0x7   : > { %p2728_p3 = scmp.eq.s32.totalorder %s2504_s21, 0  ;;  %p1558_p4 = scmp.ge.s32.totalorder %s2440_s20, 1 }
   0x8   : > { %p87_p5 = por %p86_p1, %p85_p0  ;;  %p149_p6 = scmp.lt.s32.totalorder %s2440_s20, 4 }
   0x9   : > { %p2515_p7 = por %p2728_p3, %p91_p2  ;;  %s2442_s24 = smov [#allocation4]  }
   0xa   : > { %p2519_p8 = pnand %p1558_p4, %p149_p6  ;;  %s161_s25 = sshll.u32 %s2442_s24, 4  ;;  %s162_s25 = int_to_ptr.vmem [resolvable:$true] %s161_s25 }
   0xb   : > { %p2166_p11 = scmp.lt.s32.totalorder %s2440_s20, 3  ;;  %s2285_s28 = scalar_lea.vmem %s162_s25, 1024 }
   0xc   : > { %p2153_p9 = pneg %p2519_p8  ;;  %p2286_p0 = scmp.ne.s32.totalorder %s162_s25, %s2285_s28 }
   0xd   : > { %p2532_p12 = pnand %p2166_p11, %p87_p5  ;;  %p2293_p4 = scmp.lt.s32.totalorder %s162_s25, %s162_s25 }
   0xe   : > { %p2527_p10 = pnand %p2153_p9, %p2728_p3  ;;  %p2294_p6 = scmp.lt.s32.totalorder %s2285_s28, %s2285_s28 }
  0x10   : > { %p2276_p13 = pneg %p2527_p10  ;;  %p2295_p9 = por %p2294_p6, %p2293_p4 }
  0x12   : > { %p2288_p1 = pnand %p2286_p0, %p2276_p13 }
  0x14   : > { %p2289_p2 = pneg %p2288_p1 }
  0x16   : > { %p2296_p3 = pnand %p2295_p9, %p2289_p2 }
  0x18   : > { %2299 = shalt.err (!%p2296_p3)
}
  0x19   : > { %s2729_s29 = smov 64   ;;  %s2444_s30 = smov 4  }
  0x1a   : > { %2156 = dma.hbm_to_vmem [thread:$0]  (!%p2527_p10), %s2723_s0, 1024, %s162_s25, [#allocation5], %s2729_s29, %s2729_s29, %s2444_s30  }
  0x1b   : > { %s2445_s7 = smov [#allocation7]  }
  0x1c   : > { %s174_s8 = sshll.u32 %s2445_s7, 4  ;;  %s175_s8 = int_to_ptr.vmem [resolvable:$true] %s174_s8 }
  0x1d   : > { %s2311_s9 = scalar_lea.vmem %s175_s8, 1024  ;;  %p2319_p0 = scmp.lt.s32.totalorder %s175_s8, %s175_s8 }
  0x1e   : > { %p2312_p5 = scmp.ne.s32.totalorder %s175_s8, %s2311_s9  ;;  %p2320_p1 = scmp.lt.s32.totalorder %s2311_s9, %s2311_s9 }
  0x20   : > { %p2314_p3 = pnand %p2312_p5, %p2276_p13  ;;  %p2321_p2 = por %p2320_p1, %p2319_p0 }
  0x22   : > { %p2315_p11 = pneg %p2314_p3 }
  0x24   : > { %p2322_p4 = pnand %p2321_p2, %p2315_p11 }
  0x26   : > { %2325 = shalt.err (!%p2322_p4)
}
  0x27   : > { %2159 = dma.hbm_to_vmem [thread:$0]  (!%p2527_p10), %s2724_s1, 1024, %s175_s8, [#allocation8], %s2729_s29, %s2729_s29, %s2444_s30  }
  0x28   : > { %s29_s12 = sadd.s32 1, %s2436_s19  ;;  %s78_s13 = sadd.s32 1, %s2428_s17 }
  0x29   : > { %p31_p13 = scmp.ge.s32.totalorder %s29_s12, 3  ;;  %s188_s14 = sand.u32 1, %s2440_s20  }
  0x2a   : > { %s190_s15 = sand.u32 1, %s2428_s17   ;;  %s1691_s25 = sshll.u32 %s2436_s19, 10 }
  0x2b   : > { %s2745_s12 = smov (%p31_p13, %s29_s12), 0  ;;  %s1562_s24 = sshll.u32 %s190_s15, 6 }
  0x2c   : > { %s75_s26 = ssub.s32 %s2436_s19, %s2745_s12  ;;  %s198_s6 = scalar_lea.hbm %s2725_s2, %s1691_s25 }
  0x2d   : > { %p76_p6 = scmp.eq.s32.totalorder %s75_s26, 0  ;;  %s192_s7 = scalar_lea.vmem [#allocation9], %s1562_s24 }
  0x2e   : > { %s199_s9 = sshll.u32 %s192_s7, 4  ;;  %s189_s10 = scalar_lea.sflag [#allocation5], %s188_s14  ;;  %s200_s9 = int_to_ptr.vmem [resolvable:$true] %s199_s9 }
  0x2f   : > { %s2573_s8 = scalar_select %p76_p6, %s2428_s17, %s78_s13  }
  0x30   : > { %p2328_p10 = pneg %p2532_p12  ;;  %s2339_s11 = scalar_lea.vmem %s200_s9, 1024 }
  0x31   : > { %p2340_p9 = scmp.ne.s32.totalorder %s200_s9, %s2339_s11  ;;  %s2446_s15 = smov [#allocation9]  }
  0x32   : > { %s2344_s29 = sshll.u32 %s2446_s15, 4  ;;  %s2345_s29 = int_to_ptr.vmem [resolvable:$false] %s2344_s29 }
  0x33   : > { %p2342_p5 = pnand %p2340_p9, %p2328_p10  ;;  %s2346_s26 = scalar_lea.vmem %s2345_s29, 2048 }
  0x34   : > { %p2347_p11 = scmp.lt.s32.totalorder %s200_s9, %s2345_s29  ;;  %p2348_p0 = scmp.lt.s32.totalorder %s2346_s26, %s2339_s11 }
  0x35   : > { %p2343_p3 = pneg %p2342_p5 }
  0x36   : > { %p2349_p1 = por %p2348_p0, %p2347_p11 }
  0x38   : > { %p2350_p2 = pnand %p2349_p1, %p2343_p3 }
  0x3a   : > { %2353 = shalt.err (!%p2350_p2)
}
  0x3b   : > { %s2734_s13 = smov 64   ;;  %217 = sbr.rel (%p2519_p8) target bundleno = 1085 (0x43d), region = 36 }
  0x3c   : > { %2163 = dma.hbm_to_vmem [thread:$0]  (!%p2532_p12), %s198_s6, 1024, %s200_s9, %s189_s10, %s2734_s13, %s2734_s13, %s2444_s30  }
  0x3d   : > { %p2735_p4 = scmp.eq.s32.totalorder (!%p2519_p8), %s2504_s21, 0 }
  0x40   : > { %2403 = dma.done.wait (%p2735_p4), [#allocation5], 1024   ;;  %p2736_p13 = pmov %p2735_p4 }
  0x41   : > { %p2737_p6 = pmov %p2735_p4 }
  0x42   : > { %2405 = vsyncadd (%p2736_p13), [#allocation5], 4294966272 }
  0x43   : > { %2407 = dma.done.wait (%p2737_p6), [#allocation8], 1024   ;;  %p2738_p10 = pmov %p2735_p4 }
  0x44   : > { %s227_s27 = sand.u32 1, %s2504_s21   ;;  %s229_s29 = sand.u32 1, %s2424_s16  }
  0x45   : > { %2409 = vsyncadd (%p2738_p10), [#allocation8], 4294966272  ;;  %s1568_s30 = sshll.u32 %s229_s29, 6  ;;  %s228_s23 = scalar_lea.sflag [#allocation5], %s227_s27 }
  0x46   : > { %s2594_s14 = scalar_lea.vmem [#allocation9], %s1568_s30 }
  0x47   : > { %2411 = dma.done.wait (%p2515_p7), %s228_s23, 1024  }
  0x48   : > { %2413 = vsyncadd (%p2515_p7), %s228_s23, 4294966272  ;;  %p254_p8 = scmp.lt.s32.totalorder %s2432_s18, 2  ;;  %p259_p12 = scmp.eq.s32.totalorder %s2432_s18, 0 }
  0x49   : > { %v2226_v0 = vld [vmem:[%s2594_s14 + $0x38] sm:$0xff] (%p259_p12)   ;;  %v2227_v1 = vld [vmem:[%s2594_s14 + $0x30] sm:$0xff] (%p259_p12)   ;;  %v2228_v2 = vld [vmem:[%s2594_s14 + $0x28] sm:$0xff] (%p259_p12)  }
  0x4a   : > { %s255_s24 = scalar_select %p254_p8, %s2432_s18, 2  ;;  %1947 = vmatprep.subr.bf16.mxu0 (%p259_p12), %v2226_v0  ;;  %2075 = vmatprep.subr.bf16.mxu1 (%p259_p12), %v2226_v0  ;;  %v2229_v3 = vld [vmem:[%s2594_s14 + $0x20] sm:$0xff] (%p259_p12)   ;;  %v2230_v6 = vld [vmem:[%s2594_s14 + $0x18] sm:$0xff] (%p259_p12)   ;;  %v2231_v7 = vld [vmem:[%s2594_s14 + $0x10] sm:$0xff] (%p259_p12)  }
  0x4b   : > { %264 = sbr.rel (!%p259_p12) target bundleno = 316 (0x13c), region = 52  ;;  %1948 = vmatpush3.bf16.msra.mxu0 (%p259_p12), %v2226_v0  ;;  %2083 = vmatpush3.bf16.msra.mxu1 (%p259_p12), %v2226_v0  ;;  %v2234_v4 = vld [vmem:[#allocation7] sm:$0xff] (%p259_p12)   ;;  %v2232_v8 = vld [vmem:[%s2594_s14 + $0x8] sm:$0xff] (%p259_p12)   ;;  %v2238_v12 = vld [vmem:[#allocation7 + $0x10] sm:$0xff] (%p259_p12)  }
  0x4c   : > { %s2606_s5 = scalar_lea.vmem %s2726_s3, %s255_s24  ;;  %1949 = vmatprep.subr.bf16.mxu0 (%p259_p12), %v2227_v1  ;;  %2076 = vmatprep.subr.bf16.mxu1 (%p259_p12), %v2227_v1  ;;  %v2235_v5 = vld [vmem:[#allocation7 + $0x20] sm:$0xff] (%p259_p12)   ;;  %v2236_v10 = vld [vmem:[#allocation7 + $0x8] sm:$0xff] (%p259_p12)   ;;  %v2239_v13 = vld [vmem:[#allocation7 + $0x30] sm:$0xff] (%p259_p12)  }
  0x4d   : > { %1963 = vmatprep.mubr.bf16.mxu0 (%p259_p12), %v2234_v4  ;;  %1971 = vmatprep.mubr.bf16.mxu1 (%p259_p12), %v2235_v5  ;;  %v2233_v9 = vld [vmem:[%s2594_s14] sm:$0xff] (%p259_p12)   ;;  %v2237_v11 = vld [vmem:[#allocation7 + $0x28] sm:$0xff] (%p259_p12)   ;;  %v2240_v14 = vld [vmem:[#allocation7 + $0x18] sm:$0xff] (%p259_p12)  }
  0x4e   : > { %v2241_v15 = vld [vmem:[#allocation7 + $0x38] sm:$0xff] (%p259_p12)  }
  0x4f   : > { %1950 = vmatpush3.bf16.msra.mxu0 (%p259_p12), %v2227_v1  ;;  %2084 = vmatpush3.bf16.msra.mxu1 (%p259_p12), %v2227_v1 }
  0x50   : > { %1951 = vmatprep.subr.bf16.mxu0 %v2228_v2  ;;  %2077 = vmatprep.subr.bf16.mxu1 %v2228_v2 }
  0x53   : > { %1952 = vmatpush3.bf16.msra.mxu0 %v2228_v2  ;;  %2085 = vmatpush3.bf16.msra.mxu1 %v2228_v2 }
  0x54   : > { %1953 = vmatprep.subr.bf16.mxu0 %v2229_v3  ;;  %2078 = vmatprep.subr.bf16.mxu1 %v2229_v3 }
  0x57   : > { %1954 = vmatpush3.bf16.msra.mxu0 %v2229_v3  ;;  %2086 = vmatpush3.bf16.msra.mxu1 %v2229_v3 }
  0x58   : > { %1955 = vmatprep.subr.bf16.mxu0 %v2230_v6  ;;  %2079 = vmatprep.subr.bf16.mxu1 %v2230_v6 }
  0x5b   : > { %1956 = vmatpush3.bf16.msra.mxu0 %v2230_v6  ;;  %2087 = vmatpush3.bf16.msra.mxu1 %v2230_v6 }
  0x5c   : > { %1957 = vmatprep.subr.bf16.mxu0 %v2231_v7  ;;  %2080 = vmatprep.subr.bf16.mxu1 %v2231_v7 }
  0x5f   : > { %1958 = vmatpush3.bf16.msra.mxu0 %v2231_v7  ;;  %2088 = vmatpush3.bf16.msra.mxu1 %v2231_v7 }
  0x60   : > { %1959 = vmatprep.subr.bf16.mxu0 %v2232_v8  ;;  %2081 = vmatprep.subr.bf16.mxu1 %v2232_v8 }
  0x63   : > { %1960 = vmatpush3.bf16.msra.mxu0 %v2232_v8  ;;  %2089 = vmatpush3.bf16.msra.mxu1 %v2232_v8 }
  0x64   : > { %1961 = vmatprep.subr.bf16.mxu0 %v2233_v9  ;;  %2082 = vmatprep.subr.bf16.mxu1 %v2233_v9 }
  0x67   : > { %1962 = vmatpush3.bf16.msra.mxu0 %v2233_v9  ;;  %2090 = vmatpush3.bf16.msra.mxu1 %v2233_v9 }
  0x6a   : > { %1964 = vmatmul.mubr.bf16.vlgmr.msra.gmra.mxu0 %v2236_v10  ;;  %1972 = vmatmul.mubr.bf16.vlgmr.msra.gmra.mxu1 %v2237_v11 }
  0x6b   : > { %1967 = vmatprep.mubr.bf16.mxu0 %v2238_v12  ;;  %1975 = vmatprep.mubr.bf16.mxu1 %v2239_v13 }
  0x72   : > { %1968 = vmatmul.mubr.bf16.gmra.mxu0 %v2240_v14  ;;  %1976 = vmatmul.mubr.bf16.gmra.mxu1 %v2241_v15 }
 0x12a   : > { %v1965_v16 = vpop.f32.mrf.mxu0  ;;  %v1973_v17 = vpop.f32.mrf.mxu1 }
 0x12c   : > { %v427_v18 = vpop.f32.mrf.mxu0  ;;  %v459_v19 = vpop.f32.mrf.mxu1 }
 0x12e   : > { %v1966_v20 = vpop.f32.mrf.mxu0  ;;  %v1974_v21 = vpop.f32.mrf.mxu1 }
 0x12f   : > { %v1750_v22 = vpack.c.bf16 %v1966_v20, %v1965_v16  ;;  %v1770_v23 = vpack.c.bf16 %v1974_v21, %v1973_v17 }
 0x130   : > { %v430_v24 = vpop.f32.mrf.mxu0  ;;  %v462_v25 = vpop.f32.mrf.mxu1 }
 0x131   : > { %1862 = vst [vmem:[#allocation3 + $0x8] sm:$0xff] %v1750_v22   ;;  %1866 = vst [vmem:[#allocation3 + $0x28] sm:$0xff] %v1770_v23   ;;  %v1745_v26 = vpack.c.bf16 %v430_v24, %v427_v18  ;;  %v1765_v27 = vpack.c.bf16 %v462_v25, %v459_v19 }
 0x132   : > { %v1969_v28 = vpop.f32.mrf.mxu0  ;;  %v1977_v29 = vpop.f32.mrf.mxu1 }
 0x133   : > { %1746 = vst [vmem:[#allocation3] sm:$0xff] %v1745_v26   ;;  %1865 = vst [vmem:[#allocation3 + $0x20] sm:$0xff] %v1765_v27  }
 0x134   : > { %v443_v30 = vpop.f32.mrf.mxu0  ;;  %v475_v31 = vpop.f32.mrf.mxu1 }
 0x136   : > { %v1970_v32 = vpop.f32.mrf.mxu0  ;;  %v1978_v33 = vpop.f32.mrf.mxu1 }
 0x137   : > { %v1760_v34 = vpack.c.bf16 %v1970_v32, %v1969_v28  ;;  %v1780_v35 = vpack.c.bf16 %v1978_v33, %v1977_v29 }
 0x138   : > { %v446_v36 = vpop.f32.mrf.mxu0  ;;  %v478_v37 = vpop.f32.mrf.mxu1 }
 0x139   : > { %1864 = vst [vmem:[#allocation3 + $0x18] sm:$0xff] %v1760_v34   ;;  %1868 = vst [vmem:[#allocation3 + $0x38] sm:$0xff] %v1780_v35   ;;  %v1755_v38 = vpack.c.bf16 %v446_v36, %v443_v30  ;;  %v1775_v39 = vpack.c.bf16 %v478_v37, %v475_v31 }
 0x13b   : > { %1863 = vst [vmem:[#allocation3 + $0x10] sm:$0xff] %v1755_v38   ;;  %1867 = vst [vmem:[#allocation3 + $0x30] sm:$0xff] %v1775_v39  }
 0x13c PF: > { %p570_p7 = scmp.gt.s32.totalorder %s2432_s18, 0 }
 0x13d   : > { %v2242_v40 = vld [vmem:[%s2594_s14 + $0x38] sm:$0xff] (%p570_p7)   ;;  %v2243_v41 = vld [vmem:[%s2594_s14 + $0x30] sm:$0xff] (%p570_p7)   ;;  %v2244_v42 = vld [vmem:[%s2594_s14 + $0x28] sm:$0xff] (%p570_p7)  }
 0x13e   : > { %574 = sbr.rel (!%p570_p7) target bundleno = 560 (0x230), region = 56  ;;  %1979 = vmatprep.subr.bf16.mxu0 (%p570_p7), %v2242_v40  ;;  %2091 = vmatprep.subr.bf16.mxu1 (%p570_p7), %v2242_v40  ;;  %v2245_v43 = vld [vmem:[%s2594_s14 + $0x20] sm:$0xff] (%p570_p7)   ;;  %v2246_v46 = vld [vmem:[%s2594_s14 + $0x18] sm:$0xff] (%p570_p7)   ;;  %v2247_v47 = vld [vmem:[%s2594_s14 + $0x10] sm:$0xff] (%p570_p7)  }
 0x13f   : > { %1980 = vmatpush3.bf16.msra.mxu0 (%p570_p7), %v2242_v40  ;;  %2099 = vmatpush3.bf16.msra.mxu1 (%p570_p7), %v2242_v40  ;;  %v2250_v44 = vld [vmem:[#allocation2] sm:$0xff] (%p570_p7)   ;;  %v2248_v48 = vld [vmem:[%s2594_s14 + $0x8] sm:$0xff] (%p570_p7)   ;;  %v2254_v52 = vld [vmem:[#allocation2 + $0x10] sm:$0xff] (%p570_p7)  }
 0x140   : > { %1981 = vmatprep.subr.bf16.mxu0 (%p570_p7), %v2243_v41  ;;  %2092 = vmatprep.subr.bf16.mxu1 (%p570_p7), %v2243_v41  ;;  %v2251_v45 = vld [vmem:[#allocation2 + $0x20] sm:$0xff] (%p570_p7)   ;;  %v2252_v50 = vld [vmem:[#allocation2 + $0x8] sm:$0xff] (%p570_p7)   ;;  %v2255_v53 = vld [vmem:[#allocation2 + $0x30] sm:$0xff] (%p570_p7)  }
 0x141   : > { %1995 = vmatprep.mubr.bf16.mxu0 (%p570_p7), %v2250_v44  ;;  %2003 = vmatprep.mubr.bf16.mxu1 (%p570_p7), %v2251_v45  ;;  %v2249_v49 = vld [vmem:[%s2594_s14] sm:$0xff] (%p570_p7)   ;;  %v2253_v51 = vld [vmem:[#allocation2 + $0x28] sm:$0xff] (%p570_p7)   ;;  %v2256_v54 = vld [vmem:[#allocation2 + $0x18] sm:$0xff] (%p570_p7)  }
 0x142   : > { %v2257_v55 = vld [vmem:[#allocation2 + $0x38] sm:$0xff] (%p570_p7)  }
 0x143   : > { %1982 = vmatpush3.bf16.msra.mxu0 %v2243_v41  ;;  %2100 = vmatpush3.bf16.msra.mxu1 %v2243_v41 }
 0x144   : > { %1983 = vmatprep.subr.bf16.mxu0 %v2244_v42  ;;  %2093 = vmatprep.subr.bf16.mxu1 %v2244_v42 }
 0x147   : > { %1984 = vmatpush3.bf16.msra.mxu0 %v2244_v42  ;;  %2101 = vmatpush3.bf16.msra.mxu1 %v2244_v42 }
 0x148   : > { %1985 = vmatprep.subr.bf16.mxu0 %v2245_v43  ;;  %2094 = vmatprep.subr.bf16.mxu1 %v2245_v43 }
 0x14b   : > { %1986 = vmatpush3.bf16.msra.mxu0 %v2245_v43  ;;  %2102 = vmatpush3.bf16.msra.mxu1 %v2245_v43 }
 0x14c   : > { %1987 = vmatprep.subr.bf16.mxu0 %v2246_v46  ;;  %2095 = vmatprep.subr.bf16.mxu1 %v2246_v46 }
 0x14f   : > { %1988 = vmatpush3.bf16.msra.mxu0 %v2246_v46  ;;  %2103 = vmatpush3.bf16.msra.mxu1 %v2246_v46 }
 0x150   : > { %1989 = vmatprep.subr.bf16.mxu0 %v2247_v47  ;;  %2096 = vmatprep.subr.bf16.mxu1 %v2247_v47 }
 0x153   : > { %1990 = vmatpush3.bf16.msra.mxu0 %v2247_v47  ;;  %2104 = vmatpush3.bf16.msra.mxu1 %v2247_v47 }
 0x154   : > { %1991 = vmatprep.subr.bf16.mxu0 %v2248_v48  ;;  %2097 = vmatprep.subr.bf16.mxu1 %v2248_v48 }
 0x157   : > { %1992 = vmatpush3.bf16.msra.mxu0 %v2248_v48  ;;  %2105 = vmatpush3.bf16.msra.mxu1 %v2248_v48 }
 0x158   : > { %1993 = vmatprep.subr.bf16.mxu0 %v2249_v49  ;;  %2098 = vmatprep.subr.bf16.mxu1 %v2249_v49 }
 0x15b   : > { %1994 = vmatpush3.bf16.msra.mxu0 %v2249_v49  ;;  %2106 = vmatpush3.bf16.msra.mxu1 %v2249_v49 }
 0x15e   : > { %1996 = vmatmul.mubr.bf16.vlgmr.msra.gmra.mxu0 %v2252_v50  ;;  %2004 = vmatmul.mubr.bf16.vlgmr.msra.gmra.mxu1 %v2253_v51 }
 0x15f   : > { %1999 = vmatprep.mubr.bf16.mxu0 %v2254_v52  ;;  %2007 = vmatprep.mubr.bf16.mxu1 %v2255_v53 }
 0x166   : > { %2000 = vmatmul.mubr.bf16.gmra.mxu0 %v2256_v54  ;;  %2008 = vmatmul.mubr.bf16.gmra.mxu1 %v2257_v55 }
 0x21e   : > { %v1997_v56 = vpop.f32.mrf.mxu0  ;;  %v2005_v57 = vpop.f32.mrf.mxu1 }
 0x220   : > { %v737_v58 = vpop.f32.mrf.mxu0  ;;  %v769_v59 = vpop.f32.mrf.mxu1 }
 0x222   : > { %v1998_v60 = vpop.f32.mrf.mxu0  ;;  %v2006_v61 = vpop.f32.mrf.mxu1 }
 0x223   : > { %v1790_v62 = vpack.c.bf16 %v1998_v60, %v1997_v56  ;;  %v1810_v63 = vpack.c.bf16 %v2006_v61, %v2005_v57 }
 0x224   : > { %v740_v0 = vpop.f32.mrf.mxu0  ;;  %v772_v1 = vpop.f32.mrf.mxu1 }
 0x225   : > { %1869 = vst [vmem:[#allocation3 + $0x8] sm:$0xff] %v1790_v62   ;;  %1873 = vst [vmem:[#allocation3 + $0x28] sm:$0xff] %v1810_v63   ;;  %v1785_v2 = vpack.c.bf16 %v740_v0, %v737_v58  ;;  %v1805_v3 = vpack.c.bf16 %v772_v1, %v769_v59 }
 0x226   : > { %v2001_v4 = vpop.f32.mrf.mxu0  ;;  %v2009_v5 = vpop.f32.mrf.mxu1 }
 0x227   : > { %1786 = vst [vmem:[#allocation3] sm:$0xff] %v1785_v2   ;;  %1872 = vst [vmem:[#allocation3 + $0x20] sm:$0xff] %v1805_v3  }
 0x228   : > { %v753_v6 = vpop.f32.mrf.mxu0  ;;  %v785_v7 = vpop.f32.mrf.mxu1 }
 0x22a   : > { %v2002_v8 = vpop.f32.mrf.mxu0  ;;  %v2010_v9 = vpop.f32.mrf.mxu1 }
 0x22b   : > { %v1800_v10 = vpack.c.bf16 %v2002_v8, %v2001_v4  ;;  %v1820_v11 = vpack.c.bf16 %v2010_v9, %v2009_v5 }
 0x22c   : > { %v756_v12 = vpop.f32.mrf.mxu0  ;;  %v788_v13 = vpop.f32.mrf.mxu1 }
 0x22d   : > { %1871 = vst [vmem:[#allocation3 + $0x18] sm:$0xff] %v1800_v10   ;;  %1875 = vst [vmem:[#allocation3 + $0x38] sm:$0xff] %v1820_v11   ;;  %v1795_v14 = vpack.c.bf16 %v756_v12, %v753_v6  ;;  %v1815_v15 = vpack.c.bf16 %v788_v13, %v785_v7 }
 0x22f   : > { %1870 = vst [vmem:[#allocation3 + $0x10] sm:$0xff] %v1795_v14   ;;  %1874 = vst [vmem:[#allocation3 + $0x30] sm:$0xff] %v1815_v15  }
 0x230 PF: > { %v2625_v16 = vld [vmem:[#allocation4] sm:$0xf]  ;;  %v2627_v17 = vld [vmem:[#allocation4 + $0x4] sm:$0xf]  ;;  %v2629_v18 = vld [vmem:[#allocation4 + $0x8] sm:$0xf] }
 0x231   : > { %v2631_v19 = vld [vmem:[#allocation4 + $0xc] sm:$0xf]  ;;  %v2633_v20 = vld [vmem:[#allocation4 + $0x10] sm:$0xf]  ;;  %v2635_v21 = vld [vmem:[#allocation4 + $0x14] sm:$0xf] }
 0x232   : > { %v2637_v22 = vld [vmem:[#allocation4 + $0x18] sm:$0xf]  ;;  %v2639_v23 = vld [vmem:[#allocation4 + $0x1c] sm:$0xf]  ;;  %v2641_v24 = vld [vmem:[#allocation4 + $0x20] sm:$0xf] }
 0x233   : > { %v2643_v25 = vld [vmem:[#allocation4 + $0x24] sm:$0xf]  ;;  %v2645_v26 = vld [vmem:[#allocation4 + $0x28] sm:$0xf]  ;;  %v2647_v27 = vld [vmem:[#allocation4 + $0x2c] sm:$0xf] }
 0x234   : > { %v2649_v28 = vld [vmem:[#allocation4 + $0x30] sm:$0xf]  ;;  %v2651_v29 = vld [vmem:[#allocation4 + $0x34] sm:$0xf]  ;;  %v2653_v30 = vld [vmem:[#allocation4 + $0x38] sm:$0xf] }
 0x235   : > { %v2655_v31 = vld [vmem:[#allocation4 + $0x3c] sm:$0xf]  ;;  %p1635_p9 = scmp.eq.s32.totalorder %s2432_s18, 2 }
 0x237   : > { %904 = sbr.rel (%p1635_p9) target bundleno = 819 (0x333), region = 60 }
 0x23c   : > { %v2258_v32 = vld [vmem:[#allocation3 + $0x38] sm:$0xff]   ;;  %v2259_v33 = vld [vmem:[#allocation3 + $0x30] sm:$0xff]   ;;  %v1637_v34 = vcombine.low %v2625_v16, %v2627_v17  ;;  %v1641_v35 = vcombine.low %v2641_v24, %v2643_v25  ;;  %v2260_v36 = vld [vmem:[#allocation3 + $0x28] sm:$0xff]   ;;  %v1638_v42 = vcombine.low %v2629_v18, %v2631_v19  ;;  %v1642_v43 = vcombine.low %v2645_v26, %v2647_v27 }
 0x23d   : > { %2011 = vmatprep.subr.bf16.mxu0 %v2258_v32  ;;  %2107 = vmatprep.subr.bf16.mxu1 %v2258_v32  ;;  %v2261_v37 = vld [vmem:[#allocation3 + $0x20] sm:$0xff]   ;;  %v2262_v38 = vld [vmem:[#allocation3 + $0x18] sm:$0xff]   ;;  %v2263_v39 = vld [vmem:[#allocation3 + $0x10] sm:$0xff]   ;;  %v1639_v44 = vcombine.low %v2633_v20, %v2635_v21  ;;  %v1643_v45 = vcombine.low %v2649_v28, %v2651_v29  ;;  %v1640_v46 = vcombine.low %v2637_v22, %v2639_v23 }
 0x23e   : > { %2012 = vmatpush3.bf16.msra.mxu0 %v2258_v32  ;;  %2115 = vmatpush3.bf16.msra.mxu1 %v2258_v32  ;;  %v2264_v40 = vld [vmem:[#allocation3 + $0x8] sm:$0xff]   ;;  %v2265_v41 = vld [vmem:[#allocation3] sm:$0xff]   ;;  %v1644_v47 = vcombine.low %v2653_v30, %v2655_v31 }
 0x23f   : > { %2013 = vmatprep.subr.bf16.mxu0 %v2259_v33  ;;  %2108 = vmatprep.subr.bf16.mxu1 %v2259_v33  ;;  %v1636_v48 = vld [vmem:[%s2606_s5] ss:$0 sm:$0xff] }
 0x240   : > { %2027 = vmatprep.mubr.bf16.mxu0 %v1637_v34  ;;  %2035 = vmatprep.mubr.bf16.mxu1 %v1641_v35 }
 0x242   : > { %2014 = vmatpush3.bf16.msra.mxu0 %v2259_v33  ;;  %2116 = vmatpush3.bf16.msra.mxu1 %v2259_v33 }
 0x243   : > { %2015 = vmatprep.subr.bf16.mxu0 %v2260_v36  ;;  %2109 = vmatprep.subr.bf16.mxu1 %v2260_v36 }
 0x246   : > { %2016 = vmatpush3.bf16.msra.mxu0 %v2260_v36  ;;  %2117 = vmatpush3.bf16.msra.mxu1 %v2260_v36 }
 0x247   : > { %2017 = vmatprep.subr.bf16.mxu0 %v2261_v37  ;;  %2110 = vmatprep.subr.bf16.mxu1 %v2261_v37 }
 0x24a   : > { %2018 = vmatpush3.bf16.msra.mxu0 %v2261_v37  ;;  %2118 = vmatpush3.bf16.msra.mxu1 %v2261_v37 }
 0x24b   : > { %2019 = vmatprep.subr.bf16.mxu0 %v2262_v38  ;;  %2111 = vmatprep.subr.bf16.mxu1 %v2262_v38 }
 0x24e   : > { %2020 = vmatpush3.bf16.msra.mxu0 %v2262_v38  ;;  %2119 = vmatpush3.bf16.msra.mxu1 %v2262_v38 }
 0x24f   : > { %2021 = vmatprep.subr.bf16.mxu0 %v2263_v39  ;;  %2112 = vmatprep.subr.bf16.mxu1 %v2263_v39 }
 0x252   : > { %2022 = vmatpush3.bf16.msra.mxu0 %v2263_v39  ;;  %2120 = vmatpush3.bf16.msra.mxu1 %v2263_v39 }
 0x253   : > { %2023 = vmatprep.subr.bf16.mxu0 %v2264_v40  ;;  %2113 = vmatprep.subr.bf16.mxu1 %v2264_v40 }
 0x256   : > { %2024 = vmatpush3.bf16.msra.mxu0 %v2264_v40  ;;  %2121 = vmatpush3.bf16.msra.mxu1 %v2264_v40 }
 0x257   : > { %2025 = vmatprep.subr.bf16.mxu0 %v2265_v41  ;;  %2114 = vmatprep.subr.bf16.mxu1 %v2265_v41 }
 0x25a   : > { %2026 = vmatpush3.bf16.msra.mxu0 %v2265_v41  ;;  %2122 = vmatpush3.bf16.msra.mxu1 %v2265_v41 }
 0x25d   : > { %2028 = vmatmul.mubr.bf16.vlgmr.msra.gmra.mxu0 %v1638_v42  ;;  %2036 = vmatmul.mubr.bf16.vlgmr.msra.gmra.mxu1 %v1642_v43 }
 0x25e   : > { %2031 = vmatprep.mubr.bf16.mxu0 %v1639_v44  ;;  %2039 = vmatprep.mubr.bf16.mxu1 %v1643_v45 }
 0x265   : > { %2032 = vmatmul.mubr.bf16.gmra.mxu0 %v1640_v46  ;;  %2040 = vmatmul.mubr.bf16.gmra.mxu1 %v1644_v47 }
 0x31d   : > { %v2029_v49 = vpop.f32.mrf.mxu0  ;;  %v2037_v50 = vpop.f32.mrf.mxu1 }
 0x31e   : > { %v1067_v51 = vadd.f32 %v2029_v49, %v1636_v48  ;;  %v1099_v52 = vadd.f32 %v2037_v50, %v1636_v48 }
 0x31f   : > { %v1058_v53 = vpop.f32.mrf.mxu0  ;;  %v1090_v54 = vpop.f32.mrf.mxu1 }
 0x320   : > { %v1059_v55 = vadd.f32 %v1636_v48, %v1058_v53  ;;  %v1091_v56 = vadd.f32 %v1636_v48, %v1090_v54  ;;  %v1123_v61 = vmax.f32 %v1067_v51, 0.0  ;;  %v1131_v62 = vmax.f32 %v1099_v52, 0.0 }
 0x321   : > { %v2030_v57 = vpop.f32.mrf.mxu0  ;;  %v2038_v58 = vpop.f32.mrf.mxu1 }
 0x322   : > { %v1070_v59 = vadd.f32 %v2030_v57, %v1636_v48  ;;  %v1102_v60 = vadd.f32 %v2038_v58, %v1636_v48  ;;  %v1121_v5 = vmax.f32 %v1059_v55, 0.0  ;;  %v1129_v6 = vmax.f32 %v1091_v56, 0.0 }
 0x323   : > { %v1061_v63 = vpop.f32.mrf.mxu0  ;;  %v1093_v0 = vpop.f32.mrf.mxu1 }
 0x324   : > { %v1124_v1 = vmax.f32 %v1070_v59, 0.0  ;;  %v1132_v2 = vmax.f32 %v1102_v60, 0.0  ;;  %v1062_v3 = vadd.f32 %v1636_v48, %v1061_v63  ;;  %v1094_v4 = vadd.f32 %v1636_v48, %v1093_v0 }
 0x325   : > { %v2033_v7 = vpop.f32.mrf.mxu0  ;;  %v2041_v8 = vpop.f32.mrf.mxu1 }
 0x326   : > { %v1830_v9 = vpack.c.bf16 %v1124_v1, %v1123_v61  ;;  %v1850_v10 = vpack.c.bf16 %v1132_v2, %v1131_v62  ;;  %v1122_v11 = vmax.f32 %v1062_v3, 0.0  ;;  %v1130_v12 = vmax.f32 %v1094_v4, 0.0 }
 0x327   : > { %v1083_v13 = vadd.f32 %v2033_v7, %v1636_v48  ;;  %v1115_v14 = vadd.f32 %v2041_v8, %v1636_v48  ;;  %v1074_v15 = vpop.f32.mrf.mxu0  ;;  %v1106_v32 = vpop.f32.mrf.mxu1 }
 0x328   : > { %1876 = vst [vmem:[#allocation2 + $0x8] sm:$0xff] %v1830_v9   ;;  %1880 = vst [vmem:[#allocation2 + $0x28] sm:$0xff] %v1850_v10   ;;  %v1825_v33 = vpack.c.bf16 %v1122_v11, %v1121_v5  ;;  %v1845_v34 = vpack.c.bf16 %v1130_v12, %v1129_v6  ;;  %v1075_v35 = vadd.f32 %v1636_v48, %v1074_v15 }
 0x329   : > { %v1107_v36 = vadd.f32 %v1636_v48, %v1106_v32  ;;  %v2034_v37 = vpop.f32.mrf.mxu0  ;;  %v2042_v38 = vpop.f32.mrf.mxu1  ;;  %v1127_v41 = vmax.f32 %v1083_v13, 0.0  ;;  %v1135_v42 = vmax.f32 %v1115_v14, 0.0 }
 0x32a   : > { %1826 = vst [vmem:[#allocation2] sm:$0xff] %v1825_v33   ;;  %1879 = vst [vmem:[#allocation2 + $0x20] sm:$0xff] %v1845_v34   ;;  %v1086_v39 = vadd.f32 %v2034_v37, %v1636_v48  ;;  %v1118_v40 = vadd.f32 %v2042_v38, %v1636_v48  ;;  %v1125_v50 = vmax.f32 %v1075_v35, 0.0 }
 0x32b   : > { %v1077_v43 = vpop.f32.mrf.mxu0  ;;  %v1109_v44 = vpop.f32.mrf.mxu1  ;;  %v1133_v51 = vmax.f32 %v1107_v36, 0.0 }
 0x32c   : > { %v1128_v45 = vmax.f32 %v1086_v39, 0.0  ;;  %v1136_v46 = vmax.f32 %v1118_v40, 0.0  ;;  %v1078_v47 = vadd.f32 %v1636_v48, %v1077_v43  ;;  %v1110_v49 = vadd.f32 %v1636_v48, %v1109_v44 }
 0x32e   : > { %v1840_v52 = vpack.c.bf16 %v1128_v45, %v1127_v41  ;;  %v1860_v53 = vpack.c.bf16 %v1136_v46, %v1135_v42  ;;  %v1126_v54 = vmax.f32 %v1078_v47, 0.0  ;;  %v1134_v55 = vmax.f32 %v1110_v49, 0.0 }
 0x330   : > { %1878 = vst [vmem:[#allocation2 + $0x18] sm:$0xff] %v1840_v52   ;;  %1882 = vst [vmem:[#allocation2 + $0x38] sm:$0xff] %v1860_v53   ;;  %v1835_v56 = vpack.c.bf16 %v1126_v54, %v1125_v50  ;;  %v1855_v57 = vpack.c.bf16 %v1134_v55, %v1133_v51 }
 0x332   : > { %1877 = vst [vmem:[#allocation2 + $0x10] sm:$0xff] %v1835_v56   ;;  %1881 = vst [vmem:[#allocation2 + $0x30] sm:$0xff] %v1855_v57  }
 0x333 PF: > { %p1669_p5 = scmp.ne.s32.totalorder %s2432_s18, 2 }
 0x335   : > { %1221 = sbr.rel (%p1669_p5) target bundleno = 1069 (0x42d), region = 64 }
 0x33a   : > { %v2266_v58 = vld [vmem:[#allocation3 + $0x38] sm:$0xff]   ;;  %v2267_v59 = vld [vmem:[#allocation3 + $0x30] sm:$0xff]   ;;  %v1671_v48 = vcombine.low %v2625_v16, %v2627_v17  ;;  %v1675_v60 = vcombine.low %v2641_v24, %v2643_v25  ;;  %v2268_v61 = vld [vmem:[#allocation3 + $0x28] sm:$0xff]   ;;  %v1672_v63 = vcombine.low %v2629_v18, %v2631_v19  ;;  %v1676_v0 = vcombine.low %v2645_v26, %v2647_v27 }
 0x33b   : > { %2043 = vmatprep.subr.bf16.mxu0 %v2266_v58  ;;  %2123 = vmatprep.subr.bf16.mxu1 %v2266_v58  ;;  %v2269_v62 = vld [vmem:[#allocation3 + $0x20] sm:$0xff]   ;;  %v2270_v16 = vld [vmem:[#allocation3 + $0x18] sm:$0xff]   ;;  %v2271_v17 = vld [vmem:[#allocation3 + $0x10] sm:$0xff]   ;;  %v1673_v1 = vcombine.low %v2633_v20, %v2635_v21  ;;  %v1677_v2 = vcombine.low %v2649_v28, %v2651_v29  ;;  %v1674_v3 = vcombine.low %v2637_v22, %v2639_v23 }
 0x33c   : > { %2044 = vmatpush3.bf16.msra.mxu0 %v2266_v58  ;;  %2131 = vmatpush3.bf16.msra.mxu1 %v2266_v58  ;;  %v2272_v24 = vld [vmem:[#allocation3 + $0x8] sm:$0xff]   ;;  %v2273_v25 = vld [vmem:[#allocation3] sm:$0xff]   ;;  %v1678_v18 = vcombine.low %v2653_v30, %v2655_v31 }
 0x33d   : > { %2045 = vmatprep.subr.bf16.mxu0 %v2267_v59  ;;  %2124 = vmatprep.subr.bf16.mxu1 %v2267_v59  ;;  %v1670_v19 = vld [vmem:[%s2606_s5] ss:$0 sm:$0xff] }
 0x33e   : > { %2059 = vmatprep.mubr.bf16.mxu0 %v1671_v48  ;;  %2067 = vmatprep.mubr.bf16.mxu1 %v1675_v60 }
 0x340   : > { %2046 = vmatpush3.bf16.msra.mxu0 %v2267_v59  ;;  %2132 = vmatpush3.bf16.msra.mxu1 %v2267_v59 }
 0x341   : > { %2047 = vmatprep.subr.bf16.mxu0 %v2268_v61  ;;  %2125 = vmatprep.subr.bf16.mxu1 %v2268_v61 }
 0x344   : > { %2048 = vmatpush3.bf16.msra.mxu0 %v2268_v61  ;;  %2133 = vmatpush3.bf16.msra.mxu1 %v2268_v61 }
 0x345   : > { %2049 = vmatprep.subr.bf16.mxu0 %v2269_v62  ;;  %2126 = vmatprep.subr.bf16.mxu1 %v2269_v62 }
 0x348   : > { %2050 = vmatpush3.bf16.msra.mxu0 %v2269_v62  ;;  %2134 = vmatpush3.bf16.msra.mxu1 %v2269_v62 }
 0x349   : > { %2051 = vmatprep.subr.bf16.mxu0 %v2270_v16  ;;  %2127 = vmatprep.subr.bf16.mxu1 %v2270_v16 }
 0x34c   : > { %2052 = vmatpush3.bf16.msra.mxu0 %v2270_v16  ;;  %2135 = vmatpush3.bf16.msra.mxu1 %v2270_v16 }
 0x34d   : > { %2053 = vmatprep.subr.bf16.mxu0 %v2271_v17  ;;  %2128 = vmatprep.subr.bf16.mxu1 %v2271_v17 }
 0x350   : > { %2054 = vmatpush3.bf16.msra.mxu0 %v2271_v17  ;;  %2136 = vmatpush3.bf16.msra.mxu1 %v2271_v17 }
 0x351   : > { %2055 = vmatprep.subr.bf16.mxu0 %v2272_v24  ;;  %2129 = vmatprep.subr.bf16.mxu1 %v2272_v24 }
 0x354   : > { %2056 = vmatpush3.bf16.msra.mxu0 %v2272_v24  ;;  %2137 = vmatpush3.bf16.msra.mxu1 %v2272_v24 }
 0x355   : > { %2057 = vmatprep.subr.bf16.mxu0 %v2273_v25  ;;  %2130 = vmatprep.subr.bf16.mxu1 %v2273_v25 }
 0x358   : > { %2058 = vmatpush3.bf16.msra.mxu0 %v2273_v25  ;;  %2138 = vmatpush3.bf16.msra.mxu1 %v2273_v25 }
 0x35b   : > { %2060 = vmatmul.mubr.bf16.vlgmr.msra.gmra.mxu0 %v1672_v63  ;;  %2068 = vmatmul.mubr.bf16.vlgmr.msra.gmra.mxu1 %v1676_v0 }
 0x35c   : > { %2063 = vmatprep.mubr.bf16.mxu0 %v1673_v1  ;;  %2071 = vmatprep.mubr.bf16.mxu1 %v1677_v2 }
 0x363   : > { %2064 = vmatmul.mubr.bf16.gmra.mxu0 %v1674_v3  ;;  %2072 = vmatmul.mubr.bf16.gmra.mxu1 %v1678_v18 }
 0x41b   : > { %v2061_v26 = vpop.f32.mrf.mxu0  ;;  %v2069_v27 = vpop.f32.mrf.mxu1 }
 0x41c   : > { %v1384_v4 = vadd.f32 %v2061_v26, %v1670_v19  ;;  %v1416_v20 = vadd.f32 %v2069_v27, %v1670_v19 }
 0x41d   : > { %v1375_v21 = vpop.f32.mrf.mxu0  ;;  %v1407_v5 = vpop.f32.mrf.mxu1 }
 0x41e   : > { %1441 = vst [vmem:[#allocation10 + $0x10] sm:$0xff] %v1384_v4  ;;  %1449 = vst [vmem:[#allocation10 + $0x50] sm:$0xff] %v1416_v20  ;;  %v1376_v28 = vadd.f32 %v1670_v19, %v1375_v21  ;;  %v1408_v29 = vadd.f32 %v1670_v19, %v1407_v5 }
 0x41f   : > { %v2062_v6 = vpop.f32.mrf.mxu0  ;;  %v2070_v7 = vpop.f32.mrf.mxu1 }
 0x420   : > { %1439 = vst [vmem:[#allocation10] sm:$0xff] %v1376_v28  ;;  %1447 = vst [vmem:[#allocation10 + $0x40] sm:$0xff] %v1408_v29  ;;  %v1387_v22 = vadd.f32 %v2062_v6, %v1670_v19  ;;  %v1419_v23 = vadd.f32 %v2070_v7, %v1670_v19 }
 0x421   : > { %v1378_v30 = vpop.f32.mrf.mxu0  ;;  %v1410_v31 = vpop.f32.mrf.mxu1 }
 0x422   : > { %1442 = vst [vmem:[#allocation10 + $0x18] sm:$0xff] %v1387_v22  ;;  %1450 = vst [vmem:[#allocation10 + $0x58] sm:$0xff] %v1419_v23  ;;  %v1379_v8 = vadd.f32 %v1670_v19, %v1378_v30  ;;  %v1411_v9 = vadd.f32 %v1670_v19, %v1410_v31 }
 0x423   : > { %v2065_v10 = vpop.f32.mrf.mxu0  ;;  %v2073_v11 = vpop.f32.mrf.mxu1 }
 0x424   : > { %1440 = vst [vmem:[#allocation10 + $0x8] sm:$0xff] %v1379_v8  ;;  %1448 = vst [vmem:[#allocation10 + $0x48] sm:$0xff] %v1411_v9  ;;  %v1400_v12 = vadd.f32 %v2065_v10, %v1670_v19  ;;  %v1432_v13 = vadd.f32 %v2073_v11, %v1670_v19 }
 0x425   : > { %v1391_v14 = vpop.f32.mrf.mxu0  ;;  %v1423_v15 = vpop.f32.mrf.mxu1 }
 0x426   : > { %1445 = vst [vmem:[#allocation10 + $0x30] sm:$0xff] %v1400_v12  ;;  %1453 = vst [vmem:[#allocation10 + $0x70] sm:$0xff] %v1432_v13  ;;  %v1392_v32 = vadd.f32 %v1670_v19, %v1391_v14  ;;  %v1424_v33 = vadd.f32 %v1670_v19, %v1423_v15 }
 0x427   : > { %v2066_v34 = vpop.f32.mrf.mxu0  ;;  %v2074_v35 = vpop.f32.mrf.mxu1 }
 0x428   : > { %1443 = vst [vmem:[#allocation10 + $0x20] sm:$0xff] %v1392_v32  ;;  %1451 = vst [vmem:[#allocation10 + $0x60] sm:$0xff] %v1424_v33  ;;  %v1403_v36 = vadd.f32 %v2066_v34, %v1670_v19  ;;  %v1435_v37 = vadd.f32 %v2074_v35, %v1670_v19 }
 0x429   : > { %v1394_v38 = vpop.f32.mrf.mxu0  ;;  %v1426_v39 = vpop.f32.mrf.mxu1 }
 0x42a   : > { %1446 = vst [vmem:[#allocation10 + $0x38] sm:$0xff] %v1403_v36  ;;  %1454 = vst [vmem:[#allocation10 + $0x78] sm:$0xff] %v1435_v37  ;;  %v1395_v40 = vadd.f32 %v1670_v19, %v1394_v38  ;;  %v1427_v41 = vadd.f32 %v1670_v19, %v1426_v39 }
 0x42c   : > { %1444 = vst [vmem:[#allocation10 + $0x28] sm:$0xff] %v1395_v40  ;;  %1452 = vst [vmem:[#allocation10 + $0x68] sm:$0xff] %v1427_v41 }
 0x42d PF: > { %p2169_p3 = scmp.eq.s32.totalorder %s2504_s21, 2  ;;  %s2447_s18 = smov [#allocation10]  }
 0x42e   : > { %s1461_s22 = sshll.u32 %s2447_s18, 4  ;;  %s1462_s22 = int_to_ptr.vmem [resolvable:$true] %s1461_s22 }
 0x42f   : > { %s2354_s6 = scalar_lea.vmem %s1462_s22, 2048  ;;  %p2361_p2 = scmp.lt.s32.totalorder %s1462_s22, %s1462_s22 }
 0x430   : > { %p2355_p11 = scmp.ne.s32.totalorder %s1462_s22, %s2354_s6  ;;  %p2362_p4 = scmp.lt.s32.totalorder %s2354_s6, %s2354_s6 }
 0x432   : > { %p2356_p0 = pnand %p2355_p11, %p2169_p3  ;;  %p2363_p13 = por %p2362_p4, %p2361_p2 }
 0x434   : > { %p2357_p1 = pneg %p2356_p0 }
 0x436   : > { %p2364_p6 = pnand %p2363_p13, %p2357_p1 }
 0x438   : > { %2367 = shalt.err (!%p2364_p6)
}
 0x439   : > { %s2448_s7 = smov 128   ;;  %s2449_s9 = smov 8  }
 0x43a   : > { %2150 = dma.vmem_to_hbm [thread:$0]  (%p2169_p3), %s1462_s22, 2048, %s2727_s4, [#allocation6], %s2448_s7, %s2448_s7, %s2449_s9  }
 0x43b   : > { %2415 = dma.done.wait (%p2169_p3), [#allocation6], 2048  }
 0x43c   : > { %2417 = vsyncadd (%p2169_p3), [#allocation6], 4294965248 }
 0x43d PF: > { %s17_s20 = sadd.s32 1, %s2440_s20   ;;  %s2739_s15 = smov %s2424_s16 }
 0x43e   : > { %p14_p10 = scmp.ge.s32.totalorder %s17_s20, 5   ;;  %s2740_s16 = smov %s2428_s17 }
 0x43f   : > { %s2741_s17 = smov %s2573_s8  ;;  %s2742_s18 = smov %s2436_s19 }
 0x440   : > { %s2743_s19 = smov %s2745_s12  ;;  %16 = sbr.rel (!%p14_p10) target bundleno = 5 (0x5), region = 102 }
 0x445   :  { %1477 = vsyncpa [#allocation5], 1 }
 0x446   :  { %1479 = vsyncpa [#allocation5 + $0x1], 1 }
 0x447   :  { %1480 = vsyncpa [#allocation8], 1 }
 0x448   :  { %1481 = vsyncpa [#allocation6], 1 }
 0x449   :  { %1483 = vsyncpa [#allocation6 + $0x1], 1 }

</bundles_post_ra>
